<compile_context>
chip_gen: v7x
topology: tpu7x:2x2x1
jax: 0.10.0
libtpu: 0.0.40
codegen_flags: <defaults>
</compile_context>

<pallas_src>
import functools
import math

import jax
import jax.numpy as jnp
from jax import lax
from jax.experimental import pallas as pl
from jax.experimental.pallas import tpu as pltpu


# Scoped-VMEM cap: large enough to allow big tiles on v5e/v6e (128 MiB physical) while
# staying safely under v7x's 64 MiB per-TensorCore VMEM.
VMEM_LIMIT = 48 * 1024 * 1024


# ----------------------------------------------------------------------------
# tiling helpers
# ----------------------------------------------------------------------------
def _sublane(dtype):
    """Dtype-aware second-minor tile multiple (8 for f32, 16 for bf16, 32 for int8)."""
    itemsize = max(1, jnp.dtype(dtype).itemsize)
    return max(8, 32 // itemsize)


def _pick_tile(dim, cap, multiple):
    """Largest tile <= cap that divides `dim` and is a multiple of `multiple`,
    falling back to the full dimension (always a legal TPU block)."""
    if dim <= cap:
        return dim
    t = (cap // multiple) * multiple
    while t >= multiple:
        if dim % t == 0:
            return t
        t -= multiple
    # TODO(synk): ragged (non-divisible) dims fall back to a full-dim block.
    return dim


def _heads_per_tile(nhead, dh, cap=256):
    """Heads per QKV output tile so the matmul N-tile is a 128-multiple (or full D)."""
    if nhead * dh <= cap:
        return nhead
    for c in range(nhead, 0, -1):
        if nhead % c == 0 and c * dh <= cap and (c * dh) % 128 == 0:
            return c
    return nhead


def _compiler_params(semantics):
    return pltpu.CompilerParams(
        dimension_semantics=semantics, vmem_limit_bytes=VMEM_LIMIT
    )


# ----------------------------------------------------------------------------
# fused QKV projection
# ----------------------------------------------------------------------------
def _qkv_proj_kernel(x_ref, wq_ref, wk_ref, wv_ref, bq_ref, bk_ref, bv_ref,
                     q_ref, k_ref, v_ref, qacc, kacc, vacc,
                     *, heads_per_tile, dh, q_scale):
    """Fused q/k/v projection.  Reads x once per tile, accumulates three wide-N matmuls
    in fp32 VMEM scratch and writes outputs head-major (H, M, dh).  The softmax scale
    is folded into q here (removes a per-KV-step VPU multiply in attention)."""
    kk = pl.program_id(2)

    @pl.when(kk == 0)
    def _():
        qacc[...] = jnp.zeros_like(qacc)
        kacc[...] = jnp.zeros_like(kacc)
        vacc[...] = jnp.zeros_like(vacc)

    x = x_ref[...]
    qacc[...] += jnp.dot(x, wq_ref[...], preferred_element_type=jnp.float32)
    kacc[...] += jnp.dot(x, wk_ref[...], preferred_element_type=jnp.float32)
    vacc[...] += jnp.dot(x, wv_ref[...], preferred_element_type=jnp.float32)

    @pl.when(kk == pl.num_programs(2) - 1)
    def _():
        qf = (qacc[...] + bq_ref[...]) * q_scale     # softmax scale folded here
        kf = kacc[...] + bk_ref[...]
        vf = vacc[...] + bv_ref[...]
        # TODO(synk): per-head stores are lane-sparse when dh < 128; a fully lane-dense
        # layout would require re-splitting heads inside attention instead.
        for h in range(heads_per_tile):
            lo, hi = h * dh, (h + 1) * dh
            q_ref[h] = qf[:, lo:hi].astype(q_ref.dtype)
            k_ref[h] = kf[:, lo:hi].astype(k_ref.dtype)
            v_ref[h] = vf[:, lo:hi].astype(v_ref.dtype)


def pallas_qkv_proj(x, wq, wk, wv, bq, bk, bv, nhead, q_scale):
    """x: (M, D) -> q, k, v each (H, M, dh), head-major."""
    M, K = x.shape
    D = wq.shape[1]
    dh = D // nhead
    tm = _pick_tile(M, 256, _sublane(x.dtype))
    tk = _pick_tile(K, 512, 128)
    hpt = _heads_per_tile(nhead, dh, 256)
    tn = hpt * dh
    grid = (M // tm, nhead // hpt, K // tk)

    w_spec = pl.BlockSpec((tk, tn), lambda i, j, k: (k, j))
    b_spec = pl.BlockSpec((1, tn), lambda i, j, k: (0, j))
    o_spec = pl.BlockSpec((hpt, tm, dh), lambda i, j, k: (j, i, 0))
    out_sds = jax.ShapeDtypeStruct((nhead, M, dh), x.dtype)

    return pl.pallas_call(
        functools.partial(_qkv_proj_kernel, heads_per_tile=hpt, dh=dh, q_scale=q_scale),
        out_shape=(out_sds, out_sds, out_sds),
        grid=grid,
        in_specs=[
            pl.BlockSpec((tm, tk), lambda i, j, k: (i, k)),
            w_spec, w_spec, w_spec, b_spec, b_spec, b_spec,
        ],
        out_specs=(o_spec, o_spec, o_spec),
        scratch_shapes=[pltpu.VMEM((tm, tn), jnp.float32)] * 3,
        compiler_params=_compiler_params(("parallel", "parallel", "arbitrary")),
    )(x, wq, wk, wv, bq.reshape(1, D), bk.reshape(1, D), bv.reshape(1, D))


# ----------------------------------------------------------------------------
# flash attention with the scGPT generation mask
# ----------------------------------------------------------------------------
def _flash_attn_kernel(kb_ref, q_ref, k_ref, v_ref, o_ref, m_sc, l_sc, acc_sc,
                       *, P, t, nq, npcpt, nheads, dh):
    """Online-softmax attention over KV tiles for all heads of one (batch, q-tile).
    The KV grid axis only covers the pcpt tiles plus the query tile's own diagonal
    tile (gen x gen off-diagonal tiles are never DMA'd).  The structured mask is built
    in-kernel; matmuls stay in the input dtype."""
    ki = pl.program_id(1)
    qi = pl.program_id(0) % nq

    @pl.when(ki == 0)
    def _():
        m_sc[...] = jnp.full_like(m_sc, -jnp.inf)
        l_sc[...] = jnp.zeros_like(l_sc)
        acc_sc[...] = jnp.zeros_like(acc_sc)

    is_diag = ki == npcpt
    k_tile = jnp.where(is_diag, qi, ki)
    q_start = qi * t
    k_start = k_tile * t
    # pcpt steps always contribute; the trailing diagonal step contributes only for
    # gen query tiles (qi >= npcpt) -- for pcpt query tiles it would re-visit a tile
    # that was already processed (DMA only, compute skipped, no double counting).
    compute = jnp.logical_or(ki < npcpt, qi >= npcpt)

    @pl.when(compute)
    def _():
        q = q_ref[...]                                  # (H, t, dh), scale pre-folded
        k = k_ref[...]                                  # (H, t, dh), native dtype
        s = lax.dot_general(q, k, (((2,), (2,)), ((0,), (0,))),
                            preferred_element_type=jnp.float32)      # (H, t, t)

        # structured scGPT generation mask (no (B,S,S) bias in HBM)
        q_idx = q_start + lax.broadcasted_iota(jnp.int32, (t, t), 0)
        k_idx = k_start + lax.broadcasted_iota(jnp.int32, (t, t), 1)
        allow = (k_idx < P) | ((q_idx >= P) & (k_idx == q_idx))
        bias = jnp.where(allow, 0.0, -1e9).astype(jnp.float32) + kb_ref[...]  # (t, t)
        s = s + bias[None, :, :]

        m_prev = m_sc[...]                               # (H, t, 1)
        m_new = jnp.maximum(m_prev, jnp.max(s, axis=-1, keepdims=True))
        alpha = jnp.exp(m_prev - m_new)
        p = jnp.exp(s - m_new)
        l_sc[...] = alpha * l_sc[...] + jnp.sum(p, axis=-1, keepdims=True)
        acc_sc[...] = alpha * acc_sc[...] + lax.dot_general(
            p.astype(v_ref.dtype), v_ref[...], (((2,), (1,)), ((0,), (0,))),
            preferred_element_type=jnp.float32)
        m_sc[...] = m_new

    @pl.when(ki == npcpt)
    def _():
        ctx = acc_sc[...] / l_sc[...]                    # (H, t, dh)
        # write lane-dense (t, D) so the out-projection sees a plain (M, D) operand
        for h in range(nheads):
            o_ref[:, h * dh:(h + 1) * dh] = ctx[h].astype(o_ref.dtype)


def pallas_attention(q, k, v, kbias, P):
    """q/k/v: (H, B, S, dh) head-major, kbias: (B, 1, S) additive key-padding bias.
    Returns the merged-head context lane-dense as (B, S, D)."""
    H, B, S, dh = q.shape
    D = H * dh
    # one tile size for q and kv so the gen diagonal of a query tile lives in exactly
    # one KV tile (the query tile's own index)
    t = S if S < 128 else _pick_tile(S, 256, 128)
    nq = S // t
    npcpt = pl.cdiv(P, t)            # pcpt KV tiles
    grid = (B * nq, npcpt + 1)       # (B, qi) folded for megacore sharding on v7x

    def kv_block(i, ki):
        return jnp.where(ki < npcpt, ki, i % nq)

    q_spec = pl.BlockSpec((H, None, t, dh), lambda i, ki: (0, i // nq, i % nq, 0))
    kv_spec = pl.BlockSpec((H, None, t, dh), lambda i, ki: (0, i // nq, kv_block(i, ki), 0))
    kb_spec = pl.BlockSpec((None, 1, t), lambda i, ki: (i // nq, 0, kv_block(i, ki)))
    o_spec = pl.BlockSpec((None, t, D), lambda i, ki: (i // nq, i % nq, 0))

    return pl.pallas_call(
        functools.partial(_flash_attn_kernel, P=P, t=t, nq=nq, npcpt=npcpt,
                          nheads=H, dh=dh),
        out_shape=jax.ShapeDtypeStruct((B, S, D), q.dtype),
        grid=grid,
        in_specs=[kb_spec, q_spec, kv_spec, kv_spec],
        out_specs=o_spec,
        scratch_shapes=[
            pltpu.VMEM((H, t, 1), jnp.float32),    # running max
            pltpu.VMEM((H, t, 1), jnp.float32),    # running denom
            pltpu.VMEM((H, t, dh), jnp.float32),   # running context
        ],
        compiler_params=_compiler_params(("parallel", "arbitrary")),
    )(kbias, q, k, v)


# ----------------------------------------------------------------------------
# matmul + (bias + residual + LayerNorm) epilogue
# ----------------------------------------------------------------------------
def _linear_res_ln_kernel(x_ref, w_ref, b_ref, r_ref, g_ref, bb_ref, o_ref, acc_ref,
                          *, eps):
    kk = pl.program_id(1)

    @pl.when(kk == 0)
    def _():
        acc_ref[...] = jnp.zeros_like(acc_ref)

    acc_ref[...] += jnp.dot(x_ref[...], w_ref[...], preferred_element_type=jnp.float32)

    @pl.when(kk == pl.num_programs(1) - 1)
    def _():
        y = acc_ref[...] + b_ref[...] + r_ref[...].astype(jnp.float32)
        mu = jnp.mean(y, axis=-1, keepdims=True)
        var = jnp.mean(jnp.square(y - mu), axis=-1, keepdims=True)
        yn = (y - mu) * lax.rsqrt(var + eps)
        o_ref[...] = (yn * g_ref[...] + bb_ref[...]).astype(o_ref.dtype)


def pallas_linear_res_ln(x, w, b, res, gamma, beta, *, eps=1e-5):
    """LayerNorm(x @ w + b + res) with everything fused.  x: (M, K), w: (K, N)."""
    M, K = x.shape
    N = w.shape[1]
    tm = _pick_tile(M, 256, _sublane(x.dtype))
    tk = _pick_tile(K, 512, 128)
    grid = (M // tm, K // tk)
    return pl.pallas_call(
        functools.partial(_linear_res_ln_kernel, eps=eps),
        out_shape=jax.ShapeDtypeStruct((M, N), x.dtype),
        grid=grid,
        in_specs=[
            pl.BlockSpec((tm, tk), lambda i, k: (i, k)),
            pl.BlockSpec((tk, N), lambda i, k: (k, 0)),
            pl.BlockSpec((1, N), lambda i, k: (0, 0)),
            pl.BlockSpec((tm, N), lambda i, k: (i, 0)),
            pl.BlockSpec((1, N), lambda i, k: (0, 0)),
            pl.BlockSpec((1, N), lambda i, k: (0, 0)),
        ],
        out_specs=pl.BlockSpec((tm, N), lambda i, k: (i, 0)),
        scratch_shapes=[pltpu.VMEM((tm, N), jnp.float32)],
        compiler_params=_compiler_params(("parallel", "arbitrary")),
    )(x, w, b.reshape(1, N), res, gamma.reshape(1, N), beta.reshape(1, N))


# ----------------------------------------------------------------------------
# fully-fused FFN: LayerNorm(x + relu(x@W1+b1)@W2 + b2)
# ----------------------------------------------------------------------------
def _ffn_res_ln_kernel(x_ref, w1_ref, b1_ref, w2_ref, b2_ref, g_ref, bb_ref, o_ref,
                       acc_ref, *, eps):
    j = pl.program_id(1)

    @pl.when(j == 0)
    def _():
        acc_ref[...] = jnp.zeros_like(acc_ref)

    x = x_ref[...]
    h = jnp.dot(x, w1_ref[...], preferred_element_type=jnp.float32) + b1_ref[...]
    h = jnp.maximum(h, 0.0)
    acc_ref[...] += jnp.dot(h.astype(x.dtype), w2_ref[...],
                            preferred_element_type=jnp.float32)

    @pl.when(j == pl.num_programs(1) - 1)
    def _():
        y = acc_ref[...] + b2_ref[...] + x.astype(jnp.float32)   # residual = FFN input
        mu = jnp.mean(y, axis=-1, keepdims=True)
        var = jnp.mean(jnp.square(y - mu), axis=-1, keepdims=True)
        yn = (y - mu) * lax.rsqrt(var + eps)
        o_ref[...] = (yn * g_ref[...] + bb_ref[...]).astype(o_ref.dtype)


def pallas_ffn_res_ln(x, w1, b1, w2, b2, gamma, beta, *, eps=1e-5):
    """FFN fused end-to-end: the (M, d_ff) intermediate never touches HBM."""
    M, D = x.shape
    F = w1.shape[1]
    tm = _pick_tile(M, 256, _sublane(x.dtype))
    tf = _pick_tile(F, 512, 128)
    grid = (M // tm, F // tf)
    return pl.pallas_call(
        functools.partial(_ffn_res_ln_kernel, eps=eps),
        out_shape=jax.ShapeDtypeStruct((M, D), x.dtype),
        grid=grid,
        in_specs=[
            pl.BlockSpec((tm, D), lambda i, j: (i, 0)),
            pl.BlockSpec((D, tf), lambda i, j: (0, j)),
            pl.BlockSpec((1, tf), lambda i, j: (0, j)),
            pl.BlockSpec((tf, D), lambda i, j: (j, 0)),
            pl.BlockSpec((1, D), lambda i, j: (0, 0)),
            pl.BlockSpec((1, D), lambda i, j: (0, 0)),
            pl.BlockSpec((1, D), lambda i, j: (0, 0)),
        ],
        out_specs=pl.BlockSpec((tm, D), lambda i, j: (i, 0)),
        scratch_shapes=[pltpu.VMEM((tm, D), jnp.float32)],
        compiler_params=_compiler_params(("parallel", "arbitrary")),
    )(x, w1, b1.reshape(1, F), w2, b2.reshape(1, D),
      gamma.reshape(1, D), beta.reshape(1, D))


# ----------------------------------------------------------------------------
# standalone LayerNorm (final generator norm only)
# ----------------------------------------------------------------------------
def _layernorm_kernel(x_ref, g_ref, b_ref, o_ref, *, eps):
    x = x_ref[...].astype(jnp.float32)
    mu = jnp.mean(x, axis=-1, keepdims=True)
    var = jnp.mean(jnp.square(x - mu), axis=-1, keepdims=True)
    o_ref[...] = ((x - mu) * lax.rsqrt(var + eps) * g_ref[...] + b_ref[...]
                  ).astype(o_ref.dtype)


def pallas_layernorm(x, g, b, *, eps=1e-5):
    M, D = x.shape
    tm = _pick_tile(M, 512, _sublane(x.dtype))
    return pl.pallas_call(
        functools.partial(_layernorm_kernel, eps=eps),
        out_shape=jax.ShapeDtypeStruct((M, D), x.dtype),
        grid=(M // tm,),
        in_specs=[
            pl.BlockSpec((tm, D), lambda i: (i, 0)),
            pl.BlockSpec((1, D), lambda i: (0, 0)),
            pl.BlockSpec((1, D), lambda i: (0, 0)),
        ],
        out_specs=pl.BlockSpec((tm, D), lambda i: (i, 0)),
        compiler_params=_compiler_params(("parallel",)),
    )(x, g.reshape(1, D), b.reshape(1, D))


# ----------------------------------------------------------------------------
# Model glue (plain JAX): parameters, layer / generator loop
# ----------------------------------------------------------------------------
def init_layer_params(key, d_model, d_ff):
    ks = jax.random.split(key, 12)
    w = lambda k, s: (0.02 * jax.random.normal(k, s)).astype(jnp.float32)
    return dict(
        wq=w(ks[0], (d_model, d_model)), bq=w(ks[1], (d_model,)),
        wk=w(ks[2], (d_model, d_model)), bk=w(ks[3], (d_model,)),
        wv=w(ks[4], (d_model, d_model)), bv=w(ks[5], (d_model,)),
        wo=w(ks[6], (d_model, d_model)), bo=w(ks[7], (d_model,)),
        w1=w(ks[8], (d_model, d_ff)),    b1=w(ks[9], (d_ff,)),
        w2=w(ks[10], (d_ff, d_model)),   b2=w(ks[11], (d_model,)),
        ln1_g=jnp.ones((d_model,), jnp.float32), ln1_b=jnp.zeros((d_model,), jnp.float32),
        ln2_g=jnp.ones((d_model,), jnp.float32), ln2_b=jnp.zeros((d_model,), jnp.float32),
    )


def layer_forward(p, src, kbias, nhead, P):
    """One FlashscGPT encoder layer (post-norm, ReLU FFN, dropout=0)."""
    B, S, D = src.shape
    dh = D // nhead
    x2d = src.reshape(B * S, D)

    # fused QKV projection, emitted head-major (H, B*S, dh), softmax scale folded into q
    q, k, v = pallas_qkv_proj(x2d, p["wq"], p["wk"], p["wv"],
                              p["bq"], p["bk"], p["bv"], nhead,
                              q_scale=1.0 / math.sqrt(dh))
    q = q.reshape(nhead, B, S, dh)
    k = k.reshape(nhead, B, S, dh)
    v = v.reshape(nhead, B, S, dh)

    # flash attention; output is already lane-dense merged-head (B, S, D)
    ctx2d = pallas_attention(q, k, v, kbias, P).reshape(B * S, D)

    # out projection + residual + LayerNorm fused (standard wide-K matmul)
    x = pallas_linear_res_ln(ctx2d, p["wo"], p["bo"], x2d, p["ln1_g"], p["ln1_b"])

    # fully fused FFN (+ residual + LayerNorm)
    x = pallas_ffn_res_ln(x, p["w1"], p["b1"], p["w2"], p["b2"],
                          p["ln2_g"], p["ln2_b"])
    return x.reshape(B, S, D)


def generator_forward(params, pcpt, gen, pcpt_kpm, gen_kpm, nhead):
    B, P, D = pcpt.shape
    G = gen.shape[1]
    S = P + G
    if pcpt_kpm is None:
        pcpt_kpm = jnp.zeros((B, P), dtype=bool)
    if gen_kpm is None:
        gen_kpm = jnp.zeros((B, G), dtype=bool)
    kpm = jnp.concatenate([pcpt_kpm, gen_kpm], axis=1)          # True = padded key
    # tiny (B,1,S) additive key-padding bias; the (B,S,S) mask is never materialized
    kbias = jnp.where(kpm, -1e9, 0.0).astype(jnp.float32).reshape(B, 1, S)

    src = jnp.concatenate([pcpt, gen], axis=1)
    for lp in params["layers"]:
        src = layer_forward(lp, src, kbias, nhead, P)
    if params["norm"] is not None:
        g, b = params["norm"]
        # single fused LN over the concatenated streams (row-wise LN is identical to
        # norming pcpt and gen separately)
        src = pallas_layernorm(src.reshape(B * S, D), g, b).reshape(B, S, D)
    return src[:, :P], src[:, P:]


# ----------------------------------------------------------------------------
# Pure-JAX reference (correctness check)
# ----------------------------------------------------------------------------
def _ref_layernorm(x, g, b, eps=1e-5):
    mu = jnp.mean(x, -1, keepdims=True)
    var = jnp.mean((x - mu) ** 2, -1, keepdims=True)
    return (x - mu) * lax.rsqrt(var + eps) * g + b


def build_attn_bias_ref(B, P, G, pcpt_kpm, gen_kpm):
    S = P + G
    q_idx = jnp.arange(S)[:, None]
    k_idx = jnp.arange(S)[None, :]
    allow = (k_idx < P) | ((q_idx >= P) & (k_idx == q_idx))
    allow = jnp.broadcast_to(allow, (B, S, S))
    kpm = jnp.concatenate([pcpt_kpm, gen_kpm], axis=1)
    allow = allow & (~kpm)[:, None, :]
    return jnp.where(allow, 0.0, -1e9).astype(jnp.float32)


def _ref_layer(p, src, bias, nhead):
    B, S, D = src.shape
    dh = D // nhead
    x = src.reshape(B * S, D)
    q = (x @ p["wq"] + p["bq"]).reshape(B, S, nhead, dh).transpose(0, 2, 1, 3)
    k = (x @ p["wk"] + p["bk"]).reshape(B, S, nhead, dh).transpose(0, 2, 1, 3)
    v = (x @ p["wv"] + p["bv"]).reshape(B, S, nhead, dh).transpose(0, 2, 1, 3)
    s = jnp.einsum("bhqd,bhkd->bhqk", q, k) / jnp.sqrt(dh) + bias[:, None]
    attn = jax.nn.softmax(s, axis=-1)
    o = jnp.einsum("bhqk,bhkd->bhqd", attn, v).transpose(0, 2, 1, 3).reshape(B * S, D)
    x1 = _ref_layernorm(x + o @ p["wo"] + p["bo"], p["ln1_g"], p["ln1_b"])
    h = jnp.maximum(x1 @ p["w1"] + p["b1"], 0.0) @ p["w2"] + p["b2"]
    x2 = _ref_layernorm(x1 + h, p["ln2_g"], p["ln2_b"])
    return x2.reshape(B, S, D)


def ref_generator(params, pcpt, gen, pcpt_kpm, gen_kpm, nhead):
    B, P, D = pcpt.shape
    G = gen.shape[1]
    bias = build_attn_bias_ref(B, P, G, pcpt_kpm, gen_kpm)
    src = jnp.concatenate([pcpt, gen], axis=1)
    for lp in params["layers"]:
        src = _ref_layer(lp, src, bias, nhead)
    pcpt_out, gen_out = src[:, :P], src[:, P:]
    if params["norm"] is not None:
        g, b = params["norm"]
        pcpt_out = _ref_layernorm(pcpt_out, g, b)
        gen_out = _ref_layernorm(gen_out, g, b)
    return pcpt_out, gen_out


# ----------------------------------------------------------------------------
if __name__ == "__main__":
    B, P, G, D, H, F, L = 2, 8, 8, 32, 4, 64, 2

    key = jax.random.PRNGKey(0)
    k_pcpt, k_gen, k_layer, k_ng, k_nb = jax.random.split(key, 5)
    pcpt = jax.random.normal(k_pcpt, (B, P, D), jnp.float32)
    gen = jax.random.normal(k_gen, (B, G, D), jnp.float32)

    # key padding masks (True = padded / ignored key)
    pcpt_kpm = jnp.zeros((B, P), dtype=bool).at[1, P - 1].set(True)
    gen_kpm = jnp.zeros((B, G), dtype=bool).at[1, G - 1].set(True)

    # _get_clones deep-copies the encoder layer, so all layers share identical
    # initial weights -> reuse one deterministic parameter set L times.
    layer_params = init_layer_params(k_layer, D, F)
    norm_g = (1.0 + 0.05 * jax.random.normal(k_ng, (D,))).astype(jnp.float32)
    norm_b = (0.05 * jax.random.normal(k_nb, (D,))).astype(jnp.float32)
    params = {"layers": [layer_params] * L, "norm": (norm_g, norm_b)}

    pcpt_out, gen_out = generator_forward(params, pcpt, gen, pcpt_kpm, gen_kpm, H)
    jax.block_until_ready((pcpt_out, gen_out))

    ref_p, ref_g = ref_generator(params, pcpt, gen, pcpt_kpm, gen_kpm, H)
    assert pcpt_out.shape == (B, P, D) and gen_out.shape == (B, G, D)
    # tolerance allows for flash-accumulation reordering / scale pre-folding
    assert jnp.allclose(pcpt_out, ref_p, rtol=3e-3, atol=3e-3), float(
        jnp.max(jnp.abs(pcpt_out - ref_p)))
    assert jnp.allclose(gen_out, ref_g, rtol=3e-3, atol=3e-3), float(
        jnp.max(jnp.abs(gen_out - ref_g)))

    print("KERNEL_OK")
</pallas_src>

<mosaic_0001>
module attributes {stable_mosaic.version = 11 : i64} {
  func.func @_qkv_proj_kernel(%arg0: i32, %arg1: i32, %arg2: i32, %arg3: memref<32x32xf32, #tpu.memory_space<vmem>>, %arg4: memref<32x32xf32, #tpu.memory_space<vmem>>, %arg5: memref<32x32xf32, #tpu.memory_space<vmem>>, %arg6: memref<32x32xf32, #tpu.memory_space<vmem>>, %arg7: memref<1x32xf32, #tpu.memory_space<vmem>>, %arg8: memref<1x32xf32, #tpu.memory_space<vmem>>, %arg9: memref<1x32xf32, #tpu.memory_space<vmem>>, %arg10: memref<4x32x8xf32, #tpu.memory_space<vmem>>, %arg11: memref<4x32x8xf32, #tpu.memory_space<vmem>>, %arg12: memref<4x32x8xf32, #tpu.memory_space<vmem>>, %arg13: memref<32x32xf32, #tpu.memory_space<vmem>>, %arg14: memref<32x32xf32, #tpu.memory_space<vmem>>, %arg15: memref<32x32xf32, #tpu.memory_space<vmem>>) attributes {dimension_semantics = [#tpu.dimension_semantics<parallel>, #tpu.dimension_semantics<parallel>, #tpu.dimension_semantics<arbitrary>], iteration_bounds = array<i64: 1, 1, 1>, scalar_prefetch = 0 : i64, scratch_operands = 3 : i64, tpu.core_type = #tpu.core_type<tc>, window_params = [{transform_indices = @transform_0, window_bounds = array<i64: 32, 32>}, {transform_indices = @transform_1, window_bounds = array<i64: 32, 32>}, {transform_indices = @transform_2, window_bounds = array<i64: 32, 32>}, {transform_indices = @transform_3, window_bounds = array<i64: 32, 32>}, {transform_indices = @transform_4, window_bounds = array<i64: 1, 32>}, {transform_indices = @transform_5, window_bounds = array<i64: 1, 32>}, {transform_indices = @transform_6, window_bounds = array<i64: 1, 32>}, {transform_indices = @transform_7, window_bounds = array<i64: 4, 32, 8>}, {transform_indices = @transform_8, window_bounds = array<i64: 4, 32, 8>}, {transform_indices = @transform_9, window_bounds = array<i64: 4, 32, 8>}]} {
    %c0_i32 = arith.constant 0 : i32
    %0 = arith.cmpi eq, %arg2, %c0_i32 : i32
    %1 = arith.extui %0 : i1 to i32
    %c0_i32_0 = arith.constant 0 : i32
    %2 = arith.cmpi ne, %1, %c0_i32_0 : i32
    scf.if %2 {
      %cst_24 = arith.constant 0.000000e+00 : f32
      %22 = vector.broadcast %cst_24 : f32 to vector<32x32xf32>
      %c0_25 = arith.constant 0 : index
      %c0_26 = arith.constant 0 : index
      %23 = vector.load %arg13[%c0_25, %c0_26] : memref<32x32xf32, #tpu.memory_space<vmem>>, vector<32x32xf32>
      tpu.vector_store %arg13[%c0_25, %c0_26], %22 {strides = array<i32>} : memref<32x32xf32, #tpu.memory_space<vmem>>, vector<32x32xf32>,
      %cst_27 = arith.constant 0.000000e+00 : f32
      %24 = vector.broadcast %cst_27 : f32 to vector<32x32xf32>
      %c0_28 = arith.constant 0 : index
      %c0_29 = arith.constant 0 : index
      %25 = vector.load %arg14[%c0_28, %c0_29] : memref<32x32xf32, #tpu.memory_space<vmem>>, vector<32x32xf32>
      tpu.vector_store %arg14[%c0_28, %c0_29], %24 {strides = array<i32>} : memref<32x32xf32, #tpu.memory_space<vmem>>, vector<32x32xf32>,
      %cst_30 = arith.constant 0.000000e+00 : f32
      %26 = vector.broadcast %cst_30 : f32 to vector<32x32xf32>
      %c0_31 = arith.constant 0 : index
      %c0_32 = arith.constant 0 : index
      %27 = vector.load %arg15[%c0_31, %c0_32] : memref<32x32xf32, #tpu.memory_space<vmem>>, vector<32x32xf32>
      tpu.vector_store %arg15[%c0_31, %c0_32], %26 {strides = array<i32>} : memref<32x32xf32, #tpu.memory_space<vmem>>, vector<32x32xf32>,
    } else {
    }
    %c0 = arith.constant 0 : index
    %c0_1 = arith.constant 0 : index
    %3 = vector.load %arg3[%c0, %c0_1] : memref<32x32xf32, #tpu.memory_space<vmem>>, vector<32x32xf32>
    %c0_2 = arith.constant 0 : index
    %c0_3 = arith.constant 0 : index
    %4 = vector.load %arg13[%c0_2, %c0_3] : memref<32x32xf32, #tpu.memory_space<vmem>>, vector<32x32xf32>
    %c0_4 = arith.constant 0 : index
    %c0_5 = arith.constant 0 : index
    %5 = vector.load %arg4[%c0_4, %c0_5] : memref<32x32xf32, #tpu.memory_space<vmem>>, vector<32x32xf32>
    %cst = arith.constant dense<0.000000e+00> : vector<32x32xf32>
    %6 = tpu.matmul %3, %5, %cst {dimension_numbers = #tpu.dot_dimension_numbers<[1], [0], [0], [1], [0, 0, 1, 1], [], []>} : vector<32x32xf32>, vector<32x32xf32>, vector<32x32xf32> -> vector<32x32xf32>
    %7 = arith.addf %4, %6 : vector<32x32xf32>
    %c0_6 = arith.constant 0 : index
    %c0_7 = arith.constant 0 : index
    %8 = vector.load %arg13[%c0_6, %c0_7] : memref<32x32xf32, #tpu.memory_space<vmem>>, vector<32x32xf32>
    tpu.vector_store %arg13[%c0_6, %c0_7], %7 {strides = array<i32>} : memref<32x32xf32, #tpu.memory_space<vmem>>, vector<32x32xf32>,
    %c0_8 = arith.constant 0 : index
    %c0_9 = arith.constant 0 : index
    %9 = vector.load %arg14[%c0_8, %c0_9] : memref<32x32xf32, #tpu.memory_space<vmem>>, vector<32x32xf32>
    %c0_10 = arith.constant 0 : index
    %c0_11 = arith.constant 0 : index
    %10 = vector.load %arg5[%c0_10, %c0_11] : memref<32x32xf32, #tpu.memory_space<vmem>>, vector<32x32xf32>
    %cst_12 = arith.constant dense<0.000000e+00> : vector<32x32xf32>
    %11 = tpu.matmul %3, %10, %cst_12 {dimension_numbers = #tpu.dot_dimension_numbers<[1], [0], [0], [1], [0, 0, 1, 1], [], []>} : vector<32x32xf32>, vector<32x32xf32>, vector<32x32xf32> -> vector<32x32xf32>
    %12 = arith.addf %9, %11 : vector<32x32xf32>
    %c0_13 = arith.constant 0 : index
    %c0_14 = arith.constant 0 : index
    %13 = vector.load %arg14[%c0_13, %c0_14] : memref<32x32xf32, #tpu.memory_space<vmem>>, vector<32x32xf32>
    tpu.vector_store %arg14[%c0_13, %c0_14], %12 {strides = array<i32>} : memref<32x32xf32, #tpu.memory_space<vmem>>, vector<32x32xf32>,
    %c0_15 = arith.constant 0 : index
    %c0_16 = arith.constant 0 : index
    %14 = vector.load %arg15[%c0_15, %c0_16] : memref<32x32xf32, #tpu.memory_space<vmem>>, vector<32x32xf32>
    %c0_17 = arith.constant 0 : index
    %c0_18 = arith.constant 0 : index
    %15 = vector.load %arg6[%c0_17, %c0_18] : memref<32x32xf32, #tpu.memory_space<vmem>>, vector<32x32xf32>
    %cst_19 = arith.constant dense<0.000000e+00> : vector<32x32xf32>
    %16 = tpu.matmul %3, %15, %cst_19 {dimension_numbers = #tpu.dot_dimension_numbers<[1], [0], [0], [1], [0, 0, 1, 1], [], []>} : vector<32x32xf32>, vector<32x32xf32>, vector<32x32xf32> -> vector<32x32xf32>
    %17 = arith.addf %14, %16 : vector<32x32xf32>
    %c0_20 = arith.constant 0 : index
    %c0_21 = arith.constant 0 : index
    %18 = vector.load %arg15[%c0_20, %c0_21] : memref<32x32xf32, #tpu.memory_space<vmem>>, vector<32x32xf32>
    tpu.vector_store %arg15[%c0_20, %c0_21], %17 {strides = array<i32>} : memref<32x32xf32, #tpu.memory_space<vmem>>, vector<32x32xf32>,
    %c0_i32_22 = arith.constant 0 : i32
    %19 = arith.cmpi eq, %arg2, %c0_i32_22 : i32
    %20 = arith.extui %19 : i1 to i32
    %c0_i32_23 = arith.constant 0 : i32
    %21 = arith.cmpi ne, %20, %c0_i32_23 : i32
    scf.if %21 {
      %c0_24 = arith.constant 0 : index
      %c0_25 = arith.constant 0 : index
      %22 = vector.load %arg13[%c0_24, %c0_25] : memref<32x32xf32, #tpu.memory_space<vmem>>, vector<32x32xf32>
      %c0_26 = arith.constant 0 : index
      %c0_27 = arith.constant 0 : index
      %23 = vector.load %arg7[%c0_26, %c0_27] : memref<1x32xf32, #tpu.memory_space<vmem>>, vector<1x32xf32>
      %24 = vector.broadcast %23 : vector<1x32xf32> to vector<32x32xf32>
      %25 = arith.addf %22, %24 : vector<32x32xf32>
      %cst_28 = arith.constant 0.353553385 : f32
      %26 = vector.broadcast %cst_28 : f32 to vector<32x32xf32>
      %27 = arith.mulf %25, %26 : vector<32x32xf32>
      %c0_29 = arith.constant 0 : index
      %c0_30 = arith.constant 0 : index
      %28 = vector.load %arg14[%c0_29, %c0_30] : memref<32x32xf32, #tpu.memory_space<vmem>>, vector<32x32xf32>
      %c0_31 = arith.constant 0 : index
      %c0_32 = arith.constant 0 : index
      %29 = vector.load %arg8[%c0_31, %c0_32] : memref<1x32xf32, #tpu.memory_space<vmem>>, vector<1x32xf32>
      %30 = vector.broadcast %29 : vector<1x32xf32> to vector<32x32xf32>
      %31 = arith.addf %28, %30 : vector<32x32xf32>
      %c0_33 = arith.constant 0 : index
      %c0_34 = arith.constant 0 : index
      %32 = vector.load %arg15[%c0_33, %c0_34] : memref<32x32xf32, #tpu.memory_space<vmem>>, vector<32x32xf32>
      %c0_35 = arith.constant 0 : index
      %c0_36 = arith.constant 0 : index
      %33 = vector.load %arg9[%c0_35, %c0_36] : memref<1x32xf32, #tpu.memory_space<vmem>>, vector<1x32xf32>
      %34 = vector.broadcast %33 : vector<1x32xf32> to vector<32x32xf32>
      %35 = arith.addf %32, %34 : vector<32x32xf32>
      %36 = vector.extract_strided_slice %27 {offsets = [0, 0], sizes = [32, 8], strides = [1, 1]} : vector<32x32xf32> to vector<32x8xf32>
      %c0_37 = arith.constant 0 : index
      %c0_38 = arith.constant 0 : index
      %c0_39 = arith.constant 0 : index
      %37 = vector.load %arg10[%c0_37, %c0_38, %c0_39] : memref<4x32x8xf32, #tpu.memory_space<vmem>>, vector<1x32x8xf32>
      %38 = vector.shape_cast %37 : vector<1x32x8xf32> to vector<32x8xf32>
      %39 = vector.shape_cast %36 : vector<32x8xf32> to vector<1x32x8xf32>
      tpu.vector_store %arg10[%c0_37, %c0_38, %c0_39], %39 {strides = array<i32>} : memref<4x32x8xf32, #tpu.memory_space<vmem>>, vector<1x32x8xf32>,
      %40 = vector.extract_strided_slice %31 {offsets = [0, 0], sizes = [32, 8], strides = [1, 1]} : vector<32x32xf32> to vector<32x8xf32>
      %c0_40 = arith.constant 0 : index
      %c0_41 = arith.constant 0 : index
      %c0_42 = arith.constant 0 : index
      %41 = vector.load %arg11[%c0_40, %c0_41, %c0_42] : memref<4x32x8xf32, #tpu.memory_space<vmem>>, vector<1x32x8xf32>
      %42 = vector.shape_cast %41 : vector<1x32x8xf32> to vector<32x8xf32>
      %43 = vector.shape_cast %40 : vector<32x8xf32> to vector<1x32x8xf32>
      tpu.vector_store %arg11[%c0_40, %c0_41, %c0_42], %43 {strides = array<i32>} : memref<4x32x8xf32, #tpu.memory_space<vmem>>, vector<1x32x8xf32>,
      %44 = vector.extract_strided_slice %35 {offsets = [0, 0], sizes = [32, 8], strides = [1, 1]} : vector<32x32xf32> to vector<32x8xf32>
      %c0_43 = arith.constant 0 : index
      %c0_44 = arith.constant 0 : index
      %c0_45 = arith.constant 0 : index
      %45 = vector.load %arg12[%c0_43, %c0_44, %c0_45] : memref<4x32x8xf32, #tpu.memory_space<vmem>>, vector<1x32x8xf32>
      %46 = vector.shape_cast %45 : vector<1x32x8xf32> to vector<32x8xf32>
      %47 = vector.shape_cast %44 : vector<32x8xf32> to vector<1x32x8xf32>
      tpu.vector_store %arg12[%c0_43, %c0_44, %c0_45], %47 {strides = array<i32>} : memref<4x32x8xf32, #tpu.memory_space<vmem>>, vector<1x32x8xf32>,
      %48 = vector.extract_strided_slice %27 {offsets = [0, 8], sizes = [32, 8], strides = [1, 1]} : vector<32x32xf32> to vector<32x8xf32>
      %c1 = arith.constant 1 : index
      %c0_46 = arith.constant 0 : index
      %c0_47 = arith.constant 0 : index
      %49 = vector.load %arg10[%c1, %c0_46, %c0_47] : memref<4x32x8xf32, #tpu.memory_space<vmem>>, vector<1x32x8xf32>
      %50 = vector.shape_cast %49 : vector<1x32x8xf32> to vector<32x8xf32>
      %51 = vector.shape_cast %48 : vector<32x8xf32> to vector<1x32x8xf32>
      tpu.vector_store %arg10[%c1, %c0_46, %c0_47], %51 {strides = array<i32>} : memref<4x32x8xf32, #tpu.memory_space<vmem>>, vector<1x32x8xf32>,
      %52 = vector.extract_strided_slice %31 {offsets = [0, 8], sizes = [32, 8], strides = [1, 1]} : vector<32x32xf32> to vector<32x8xf32>
      %c1_48 = arith.constant 1 : index
      %c0_49 = arith.constant 0 : index
      %c0_50 = arith.constant 0 : index
      %53 = vector.load %arg11[%c1_48, %c0_49, %c0_50] : memref<4x32x8xf32, #tpu.memory_space<vmem>>, vector<1x32x8xf32>
      %54 = vector.shape_cast %53 : vector<1x32x8xf32> to vector<32x8xf32>
      %55 = vector.shape_cast %52 : vector<32x8xf32> to vector<1x32x8xf32>
      tpu.vector_store %arg11[%c1_48, %c0_49, %c0_50], %55 {strides = array<i32>} : memref<4x32x8xf32, #tpu.memory_space<vmem>>, vector<1x32x8xf32>,
      %56 = vector.extract_strided_slice %35 {offsets = [0, 8], sizes = [32, 8], strides = [1, 1]} : vector<32x32xf32> to vector<32x8xf32>
      %c1_51 = arith.constant 1 : index
      %c0_52 = arith.constant 0 : index
      %c0_53 = arith.constant 0 : index
      %57 = vector.load %arg12[%c1_51, %c0_52, %c0_53] : memref<4x32x8xf32, #tpu.memory_space<vmem>>, vector<1x32x8xf32>
      %58 = vector.shape_cast %57 : vector<1x32x8xf32> to vector<32x8xf32>
      %59 = vector.shape_cast %56 : vector<32x8xf32> to vector<1x32x8xf32>
      tpu.vector_store %arg12[%c1_51, %c0_52, %c0_53], %59 {strides = array<i32>} : memref<4x32x8xf32, #tpu.memory_space<vmem>>, vector<1x32x8xf32>,
      %60 = vector.extract_strided_slice %27 {offsets = [0, 16], sizes = [32, 8], strides = [1, 1]} : vector<32x32xf32> to vector<32x8xf32>
      %c2 = arith.constant 2 : index
      %c0_54 = arith.constant 0 : index
      %c0_55 = arith.constant 0 : index
      %61 = vector.load %arg10[%c2, %c0_54, %c0_55] : memref<4x32x8xf32, #tpu.memory_space<vmem>>, vector<1x32x8xf32>
      %62 = vector.shape_cast %61 : vector<1x32x8xf32> to vector<32x8xf32>
      %63 = vector.shape_cast %60 : vector<32x8xf32> to vector<1x32x8xf32>
      tpu.vector_store %arg10[%c2, %c0_54, %c0_55], %63 {strides = array<i32>} : memref<4x32x8xf32, #tpu.memory_space<vmem>>, vector<1x32x8xf32>,
      %64 = vector.extract_strided_slice %31 {offsets = [0, 16], sizes = [32, 8], strides = [1, 1]} : vector<32x32xf32> to vector<32x8xf32>
      %c2_56 = arith.constant 2 : index
      %c0_57 = arith.constant 0 : index
      %c0_58 = arith.constant 0 : index
      %65 = vector.load %arg11[%c2_56, %c0_57, %c0_58] : memref<4x32x8xf32, #tpu.memory_space<vmem>>, vector<1x32x8xf32>
      %66 = vector.shape_cast %65 : vector<1x32x8xf32> to vector<32x8xf32>
      %67 = vector.shape_cast %64 : vector<32x8xf32> to vector<1x32x8xf32>
      tpu.vector_store %arg11[%c2_56, %c0_57, %c0_58], %67 {strides = array<i32>} : memref<4x32x8xf32, #tpu.memory_space<vmem>>, vector<1x32x8xf32>,
      %68 = vector.extract_strided_slice %35 {offsets = [0, 16], sizes = [32, 8], strides = [1, 1]} : vector<32x32xf32> to vector<32x8xf32>
      %c2_59 = arith.constant 2 : index
      %c0_60 = arith.constant 0 : index
      %c0_61 = arith.constant 0 : index
      %69 = vector.load %arg12[%c2_59, %c0_60, %c0_61] : memref<4x32x8xf32, #tpu.memory_space<vmem>>, vector<1x32x8xf32>
      %70 = vector.shape_cast %69 : vector<1x32x8xf32> to vector<32x8xf32>
      %71 = vector.shape_cast %68 : vector<32x8xf32> to vector<1x32x8xf32>
      tpu.vector_store %arg12[%c2_59, %c0_60, %c0_61], %71 {strides = array<i32>} : memref<4x32x8xf32, #tpu.memory_space<vmem>>, vector<1x32x8xf32>,
      %72 = vector.extract_strided_slice %27 {offsets = [0, 24], sizes = [32, 8], strides = [1, 1]} : vector<32x32xf32> to vector<32x8xf32>
      %c3 = arith.constant 3 : index
      %c0_62 = arith.constant 0 : index
      %c0_63 = arith.constant 0 : index
      %73 = vector.load %arg10[%c3, %c0_62, %c0_63] : memref<4x32x8xf32, #tpu.memory_space<vmem>>, vector<1x32x8xf32>
      %74 = vector.shape_cast %73 : vector<1x32x8xf32> to vector<32x8xf32>
      %75 = vector.shape_cast %72 : vector<32x8xf32> to vector<1x32x8xf32>
      tpu.vector_store %arg10[%c3, %c0_62, %c0_63], %75 {strides = array<i32>} : memref<4x32x8xf32, #tpu.memory_space<vmem>>, vector<1x32x8xf32>,
      %76 = vector.extract_strided_slice %31 {offsets = [0, 24], sizes = [32, 8], strides = [1, 1]} : vector<32x32xf32> to vector<32x8xf32>
      %c3_64 = arith.constant 3 : index
      %c0_65 = arith.constant 0 : index
      %c0_66 = arith.constant 0 : index
      %77 = vector.load %arg11[%c3_64, %c0_65, %c0_66] : memref<4x32x8xf32, #tpu.memory_space<vmem>>, vector<1x32x8xf32>
      %78 = vector.shape_cast %77 : vector<1x32x8xf32> to vector<32x8xf32>
      %79 = vector.shape_cast %76 : vector<32x8xf32> to vector<1x32x8xf32>
      tpu.vector_store %arg11[%c3_64, %c0_65, %c0_66], %79 {strides = array<i32>} : memref<4x32x8xf32, #tpu.memory_space<vmem>>, vector<1x32x8xf32>,
      %80 = vector.extract_strided_slice %35 {offsets = [0, 24], sizes = [32, 8], strides = [1, 1]} : vector<32x32xf32> to vector<32x8xf32>
      %c3_67 = arith.constant 3 : index
      %c0_68 = arith.constant 0 : index
      %c0_69 = arith.constant 0 : index
      %81 = vector.load %arg12[%c3_67, %c0_68, %c0_69] : memref<4x32x8xf32, #tpu.memory_space<vmem>>, vector<1x32x8xf32>
      %82 = vector.shape_cast %81 : vector<1x32x8xf32> to vector<32x8xf32>
      %83 = vector.shape_cast %80 : vector<32x8xf32> to vector<1x32x8xf32>
      tpu.vector_store %arg12[%c3_67, %c0_68, %c0_69], %83 {strides = array<i32>} : memref<4x32x8xf32, #tpu.memory_space<vmem>>, vector<1x32x8xf32>,
    } else {
    }
    return
  }
  func.func @transform_0(%arg0: i32, %arg1: i32, %arg2: i32) -> (i32, i32) {
    %c0_i32 = arith.constant 0 : i32
    return %arg0, %arg2 : i32, i32
  }
  func.func @transform_1(%arg0: i32, %arg1: i32, %arg2: i32) -> (i32, i32) {
    %c0_i32 = arith.constant 0 : i32
    return %arg2, %arg1 : i32, i32
  }
  func.func @transform_2(%arg0: i32, %arg1: i32, %arg2: i32) -> (i32, i32) {
    %c0_i32 = arith.constant 0 : i32
    return %arg2, %arg1 : i32, i32
  }
  func.func @transform_3(%arg0: i32, %arg1: i32, %arg2: i32) -> (i32, i32) {
    %c0_i32 = arith.constant 0 : i32
    return %arg2, %arg1 : i32, i32
  }
  func.func @transform_4(%arg0: i32, %arg1: i32, %arg2: i32) -> (i32, i32) {
    %c0_i32 = arith.constant 0 : i32
    %c0_i32_0 = arith.constant 0 : i32
    return %c0_i32, %arg1 : i32, i32
  }
  func.func @transform_5(%arg0: i32, %arg1: i32, %arg2: i32) -> (i32, i32) {
    %c0_i32 = arith.constant 0 : i32
    %c0_i32_0 = arith.constant 0 : i32
    return %c0_i32, %arg1 : i32, i32
  }
  func.func @transform_6(%arg0: i32, %arg1: i32, %arg2: i32) -> (i32, i32) {
    %c0_i32 = arith.constant 0 : i32
    %c0_i32_0 = arith.constant 0 : i32
    return %c0_i32, %arg1 : i32, i32
  }
  func.func @transform_7(%arg0: i32, %arg1: i32, %arg2: i32) -> (i32, i32, i32) {
    %c0_i32 = arith.constant 0 : i32
    %c0_i32_0 = arith.constant 0 : i32
    return %arg1, %arg0, %c0_i32 : i32, i32, i32
  }
  func.func @transform_8(%arg0: i32, %arg1: i32, %arg2: i32) -> (i32, i32, i32) {
    %c0_i32 = arith.constant 0 : i32
    %c0_i32_0 = arith.constant 0 : i32
    return %arg1, %arg0, %c0_i32 : i32, i32, i32
  }
  func.func @transform_9(%arg0: i32, %arg1: i32, %arg2: i32) -> (i32, i32, i32) {
    %c0_i32 = arith.constant 0 : i32
    %c0_i32_0 = arith.constant 0 : i32
    return %arg1, %arg0, %c0_i32 : i32, i32, i32
  }
}

</mosaic_0001>

<bundles_post_ra>
// kernel: tpu_custom_call.1
= control target key start
LH: loop header
LB: loop body
LE: loop exit
PB: predicated region body
PF: predicated region fallthrough
CT: control target
= control target key end

     0   :  { %15 = vsyncpa [#allocation6], 0  ;;  %s1322_s0 = inlined_call_operand.hbm [shape: f32[32,32], index: 0, kind: input, shape index: {}]   ;;  %s1323_s1 = inlined_call_operand.hbm [shape: f32[32,32], index: 1, kind: input, shape index: {}]   ;;  %s1324_s2 = inlined_call_operand.hbm [shape: f32[32,32], index: 2, kind: input, shape index: {}]   ;;  %s1325_s3 = inlined_call_operand.hbm [shape: f32[32,32], index: 3, kind: input, shape index: {}]   ;;  %s1326_s4 = inlined_call_operand.vmem [shape: f32[1,32], index: 4, kind: input, shape index: {}]   ;;  %s1327_s5 = inlined_call_operand.vmem [shape: f32[1,32], index: 5, kind: input, shape index: {}]   ;;  %s1328_s6 = inlined_call_operand.vmem [shape: f32[1,32], index: 6, kind: input, shape index: {}]   ;;  %s1329_s7 = inlined_call_operand.vmem [shape: f32[4,32,8], index: 7, kind: output, shape index: {0}]   ;;  %s1330_s8 = inlined_call_operand.vmem [shape: f32[4,32,8], index: 8, kind: output, shape index: {1}]   ;;  %s1331_s9 = inlined_call_operand.vmem [shape: f32[4,32,8], index: 9, kind: output, shape index: {2}]  }
   0x1   :  { %16 = vsyncpa [#allocation8], 0 }
   0x2   :  { %17 = vsyncpa [#allocation11], 0  ;;  %s915_s30 = smov [#allocation7]   ;;  %s916_s11 = smov [#allocation5]  }
   0x3   :  { %s35_s10 = sshll.u32 %s915_s30, 4  ;;  %s23_s12 = sshll.u32 %s916_s11, 4  ;;  %s36_s10 = int_to_ptr.vmem [resolvable:$true] %s35_s10  ;;  %s975_s12 = int_to_ptr.vmem [resolvable:$true] %s23_s12 }
   0x4   :  { %s821_s15 = scalar_lea.hbm %s1323_s1, 512 }
   0x5   :  { %p822_p0 = scmp.ne.s32.totalorder %s1323_s1, %s821_s15  ;;  %p825_p1 = scmp.lt.u32.totalorder %s821_s15, %s1323_s1 }
   0x7   :  { %p827_p2 = pnand %p825_p1, %p822_p0 }
   0x9   :  { %830 = shalt.err (!%p827_p2)
}
   0xa   :  { %s831_s20 = scalar_lea.vmem %s36_s10, 512  ;;  %p836_p4 = scmp.lt.s32.totalorder %s36_s10, %s36_s10 }
   0xb   :  { %p832_p3 = scmp.ne.s32.totalorder %s36_s10, %s831_s20  ;;  %p837_p5 = scmp.lt.s32.totalorder %s831_s20, %s831_s20 }
   0xd   :  { %p838_p6 = por %p837_p5, %p836_p4 }
   0xf   :  { %p839_p7 = pnand %p838_p6, %p832_p3 }
  0x11   :  { %842 = shalt.err (!%p839_p7)
}
  0x12   :  { %s917_s21 = smov 128   ;;  %s918_s22 = smov 8  }
  0x13   :  { %41 = dma.hbm_to_vmem [thread:$0]  %s1323_s1, 512, %s36_s10, [#allocation8], %s917_s21, %s917_s21, %s918_s22  }
  0x14   :  { %s843_s27 = scalar_lea.hbm %s1322_s0, 512 }
  0x15   :  { %p844_p8 = scmp.ne.s32.totalorder %s1322_s0, %s843_s27  ;;  %p847_p9 = scmp.lt.u32.totalorder %s843_s27, %s1322_s0 }
  0x17   :  { %p849_p10 = pnand %p847_p9, %p844_p8 }
  0x19   :  { %852 = shalt.err (!%p849_p10)
}
  0x1a   :  { %s853_s13 = scalar_lea.vmem %s975_s12, 512  ;;  %p858_p12 = scmp.lt.s32.totalorder %s975_s12, %s975_s12 }
  0x1b   :  { %p854_p11 = scmp.ne.s32.totalorder %s975_s12, %s853_s13  ;;  %p859_p13 = scmp.lt.s32.totalorder %s853_s13, %s853_s13 }
  0x1d   :  { %p860_p0 = por %p859_p13, %p858_p12 }
  0x1f   :  { %p861_p1 = pnand %p860_p0, %p854_p11 }
  0x21   :  { %864 = shalt.err (!%p861_p1)
}
  0x22   :  { %29 = dma.hbm_to_vmem [thread:$0]  %s1322_s0, 512, %s975_s12, [#allocation6], %s917_s21, %s917_s21, %s918_s22  }
  0x23   :  { %s919_s14 = smov [#allocation9]   ;;  %s920_s16 = smov [#allocation10]  }
  0x24   :  { %s47_s15 = sshll.u32 %s919_s14, 4  ;;  %s59_s17 = sshll.u32 %s920_s16, 4  ;;  %s48_s15 = int_to_ptr.vmem [resolvable:$true] %s47_s15  ;;  %s1012_s17 = int_to_ptr.vmem [resolvable:$true] %s59_s17 }
  0x25   :  { %s865_s20 = scalar_lea.hbm %s1324_s2, 512 }
  0x26   :  { %p866_p2 = scmp.ne.s32.totalorder %s1324_s2, %s865_s20  ;;  %p869_p3 = scmp.lt.u32.totalorder %s865_s20, %s1324_s2 }
  0x28   :  { %p871_p4 = pnand %p869_p3, %p866_p2 }
  0x2a   :  { %874 = shalt.err (!%p871_p4)
}
  0x2b   :  { %s875_s0 = scalar_lea.vmem %s48_s15, 512  ;;  %p880_p6 = scmp.lt.s32.totalorder %s48_s15, %s48_s15 }
  0x2c   :  { %p876_p5 = scmp.ne.s32.totalorder %s48_s15, %s875_s0  ;;  %p881_p7 = scmp.lt.s32.totalorder %s875_s0, %s875_s0 }
  0x2e   :  { %p882_p8 = por %p881_p7, %p880_p6 }
  0x30   :  { %p883_p9 = pnand %p882_p8, %p876_p5 }
  0x32   :  { %886 = shalt.err (!%p883_p9)
}
  0x33   :  { %53 = dma.hbm_to_vmem [thread:$0]  %s1324_s2, 512, %s48_s15, [#allocation8], %s917_s21, %s917_s21, %s918_s22  }
  0x34   :  { %s887_s30 = scalar_lea.hbm %s1325_s3, 512 }
  0x35   :  { %p888_p10 = scmp.ne.s32.totalorder %s1325_s3, %s887_s30  ;;  %p891_p11 = scmp.lt.u32.totalorder %s887_s30, %s1325_s3 }
  0x37   :  { %p893_p12 = pnand %p891_p11, %p888_p10 }
  0x39   :  { %896 = shalt.err (!%p893_p12)
}
  0x3a   :  { %s897_s14 = scalar_lea.vmem %s1012_s17, 512  ;;  %p902_p0 = scmp.lt.s32.totalorder %s1012_s17, %s1012_s17 }
  0x3b   :  { %p898_p13 = scmp.ne.s32.totalorder %s1012_s17, %s897_s14  ;;  %p903_p1 = scmp.lt.s32.totalorder %s897_s14, %s897_s14 }
  0x3d   :  { %p904_p2 = por %p903_p1, %p902_p0 }
  0x3f   :  { %p905_p3 = pnand %p904_p2, %p898_p13 }
  0x41   :  { %908 = shalt.err (!%p905_p3)
}
  0x42   :  { %65 = dma.hbm_to_vmem [thread:$0]  %s1325_s3, 512, %s1012_s17, [#allocation11], %s917_s21, %s917_s21, %s918_s22  }
  0x43   :  { %909 = dma.done.wait [#allocation6], 512  }
  0x44   :  { %910 = vsyncadd [#allocation6], 4294966784 }
  0x45   :  { %911 = dma.done.wait [#allocation8], 1024  }
  0x46   :  { %912 = vsyncadd [#allocation8], 4294966272 }
  0x47   :  { %913 = dma.done.wait [#allocation11], 512  }
  0x48   :  { %914 = vsyncadd [#allocation11], 4294966784  ;;  %vm88_vm0 = vcmask 261120   ;;  %v921_v0 = vmov 0.0   ;;  %v223_v1 = vld [vmem:[#allocation9] sm:$0xff]  ;;  %v224_v2 = vld [vmem:[#allocation9 + $0x8] sm:$0xff] }
  0x49   :  { %94 = vst.msk [vmem:[#allocation3 + $0x8] sm:$0xff] %vm88_vm0, %v921_v0  ;;  %89 = vst.msk [vmem:[#allocation2] sm:$0xff] %vm88_vm0, %v921_v0  ;;  %v225_v3 = vld [vmem:[#allocation9 + $0x10] sm:$0xff]  ;;  %v791_v4 = vpack.c.bf16 %v224_v2, %v223_v1  ;;  %v226_v5 = vld [vmem:[#allocation9 + $0x18] sm:$0xff]  ;;  %vm473_vm1 = vcmask 64512   ;;  %s923_s20 = smov 112  }
  0x4a   :  { %90 = vst.msk [vmem:[#allocation2 + $0x8] sm:$0xff] %vm88_vm0, %v921_v0  ;;  %91 = vst.msk [vmem:[#allocation2 + $0x10] sm:$0xff] %vm88_vm0, %v921_v0  ;;  %v101_v6 = vld [vmem:[#allocation5] sm:$0xff]  ;;  %v795_v7 = vpack.c.bf16 %v226_v5, %v225_v3  ;;  %v110_v9 = vld [vmem:[#allocation7 + $0x8] sm:$0xff]  ;;  %s924_s11 = smov 104  }
  0x4b   :  { %92 = vst.msk [vmem:[#allocation2 + $0x18] sm:$0xff] %vm88_vm0, %v921_v0  ;;  %93 = vst.msk [vmem:[#allocation3] sm:$0xff] %vm88_vm0, %v921_v0  ;;  %763 = vmatprep.mubr.msk.f32.mxu1 %vm88_vm0, %v101_v6  ;;  %v109_v8 = vld [vmem:[#allocation7] sm:$0xff]  ;;  %v111_v10 = vld [vmem:[#allocation7 + $0x10] sm:$0xff]  ;;  %749 = vmatprep.mubr.msk.f32.mxu0 %vm88_vm0, %v101_v6 }
  0x4c   :  { %95 = vst.msk [vmem:[#allocation3 + $0x10] sm:$0xff] %vm88_vm0, %v921_v0  ;;  %96 = vst.msk [vmem:[#allocation3 + $0x18] sm:$0xff] %vm88_vm0, %v921_v0  ;;  %792 = vmatprep.subr.bf16.mxu1 %v791_v4  ;;  %v783_v11 = vpack.c.bf16 %v110_v9, %v109_v8  ;;  %v112_v12 = vld [vmem:[#allocation7 + $0x18] sm:$0xff]  ;;  %v324_v14 = vld [vmem:[#allocation10] sm:$0xff] }
  0x4d   :  { %97 = vst.msk [vmem:[#allocation4] sm:$0xff] %vm88_vm0, %v921_v0  ;;  %98 = vst.msk [vmem:[#allocation4 + $0x8] sm:$0xff] %vm88_vm0, %v921_v0  ;;  %794 = vmatpush3.bf16.msra.mxu1 %v791_v4  ;;  %v787_v13 = vpack.c.bf16 %v112_v12, %v111_v10  ;;  %v325_v15 = vld [vmem:[#allocation10 + $0x8] sm:$0xff]  ;;  %v326_v18 = vld [vmem:[#allocation10 + $0x10] sm:$0xff] }
  0x4e   :  { %99 = vst.msk [vmem:[#allocation4 + $0x10] sm:$0xff] %vm88_vm0, %v921_v0  ;;  %100 = vst.msk [vmem:[#allocation4 + $0x18] sm:$0xff] %vm88_vm0, %v921_v0  ;;  %796 = vmatprep.subr.bf16.mxu1 %v795_v7  ;;  %784 = vmatprep.subr.bf16.mxu0 %v783_v11  ;;  %v799_v16 = vpack.c.bf16 %v325_v15, %v324_v14  ;;  %v102_v17 = vld [vmem:[#allocation5 + $0x8] sm:$0xff]  ;;  %v327_v19 = vld [vmem:[#allocation10 + $0x18] sm:$0xff] }
  0x4f   :  { %786 = vmatpush3.bf16.msra.mxu0 %v783_v11  ;;  %v103_v20 = vld [vmem:[#allocation5 + $0x10] sm:$0xff]  ;;  %v803_v21 = vpack.c.bf16 %v327_v19, %v326_v18  ;;  %v104_v22 = vld [vmem:[#allocation5 + $0x18] sm:$0xff]  ;;  %v679_v48 = vld [vmem:[%s1327_s5] ss:$0 sm:$0xff]  ;;  %s922_s5 = smov 120  }
  0x50   :  { %788 = vmatprep.subr.bf16.mxu0 %v787_v13  ;;  %v220_v23 = vld [vmem:[#allocation3 + $0x8] sm:$0xff]  ;;  %v105_v29 = vld [vmem:[#allocation2] sm:$0xff] }
  0x51   :  { %798 = vmatpush3.bf16.msra.mxu1 %v795_v7  ;;  %v106_v26 = vld [vmem:[#allocation2 + $0x8] sm:$0xff]  ;;  %v107_v41 = vld [vmem:[#allocation2 + $0x10] sm:$0xff]  ;;  %v678_v56 = vld [vmem:[%s1326_s4] ss:$0 sm:$0xff] }
  0x52   :  { %807 = vmatprep.subr.bf16.mxu1 %v799_v16  ;;  %v219_v24 = vld [vmem:[#allocation3] sm:$0xff]  ;;  %v108_v38 = vld [vmem:[#allocation2 + $0x18] sm:$0xff] }
  0x53   :  { %790 = vmatpush3.bf16.msra.mxu0 %v787_v13  ;;  %v222_v32 = vld [vmem:[#allocation3 + $0x18] sm:$0xff]  ;;  %v221_v35 = vld [vmem:[#allocation3 + $0x10] sm:$0xff]  ;;  %v680_v15 = vld [vmem:[%s1328_s6] ss:$0 sm:$0xff] }
  0x54   :  { %764 = vmatmul.mubr.msk.f32.vlgmr.msra.gmra.mrb[0].mxu1 %vm88_vm0, %v102_v17  ;;  %800 = vmatprep.subr.bf16.mxu0 %v799_v16  ;;  %v321_v50 = vld [vmem:[#allocation4 + $0x8] sm:$0xff]  ;;  %v320_v52 = vld [vmem:[#allocation4] sm:$0xff] }
  0x55   :  { %766 = vmatprep.mubr.msk.f32.mxu1 %vm88_vm0, %v103_v20  ;;  %809 = vmatpush3.bf16.msra.mxu1 %v799_v16  ;;  %v323_v44 = vld [vmem:[#allocation4 + $0x18] sm:$0xff]  ;;  %v322_v47 = vld [vmem:[#allocation4 + $0x10] sm:$0xff] }
  0x56   :  { %750 = vmatmul.mubr.msk.f32.vlgmr.msra.gmra.mrb[0].mxu0 %vm88_vm0, %v102_v17  ;;  %808 = vmatprep.subr.bf16.mxu1 %v803_v21 }
  0x57   :  { %752 = vmatprep.mubr.msk.f32.mxu0 %vm88_vm0, %v103_v20  ;;  %802 = vmatpush3.bf16.msra.mxu0 %v799_v16 }
  0x58   :  { %767 = vmatmul.mubr.msk.f32.gmra.mrb[2].mxu1 %vm88_vm0, %v104_v22  ;;  %804 = vmatprep.subr.bf16.mxu0 %v803_v21 }
  0x59   :  { %810 = vmatpush3.bf16.msra.mxu1 %v803_v21  ;;  %780 = vmatprep.mubr.msk.f32.mxu1 %vm88_vm0, %v103_v20 }
  0x5a   :  { %753 = vmatmul.mubr.msk.f32.gmra.mrb[2].mxu0 %vm88_vm0, %v104_v22 }
  0x5b   :  { %806 = vmatpush3.bf16.msra.mxu0 %v803_v21  ;;  %777 = vmatprep.mubr.msk.f32.mxu0 %vm88_vm0, %v101_v6 }
  0x5c   :  { %781 = vmatmul.mubr.msk.f32.vlgmr.msra.gmra.mrb[4].mxu1 %vm88_vm0, %v104_v22 }
  0x5e   :  { %778 = vmatmul.mubr.msk.f32.vlgmr.msra.gmra.mrb[4].mxu0 %vm88_vm0, %v102_v17 }
 0x127   :  { %v765_v25 = vpop.f32.mrb[0].mxu1 }
 0x128   :  { %v313_v27 = vadd.f32 %v765_v25, %v220_v23  ;;  %v293_v28 = vpop.f32.mrb[1].mxu1 }
 0x129   :  { %v312_v30 = vadd.f32 %v293_v28, %v219_v24  ;;  %v751_v31 = vpop.f32.mrb[0].mxu0 }
 0x12a   :  { %317 = vst.msk [vmem:[#allocation3 + $0x8] sm:$0xff] %vm88_vm0, %v313_v27  ;;  %v212_v33 = vadd.f32 %v751_v31, %v106_v26  ;;  %v192_v34 = vpop.f32.mrb[1].mxu0 }
 0x12b   :  { %316 = vst.msk [vmem:[#allocation3] sm:$0xff] %vm88_vm0, %v312_v30  ;;  %v211_v36 = vadd.f32 %v192_v34, %v105_v29  ;;  %v768_v37 = vpop.f32.mrb[2].mxu1 }
 0x12c   :  { %216 = vst.msk [vmem:[#allocation2 + $0x8] sm:$0xff] %vm88_vm0, %v212_v33  ;;  %v315_v39 = vadd.f32 %v768_v37, %v222_v32  ;;  %v303_v40 = vpop.f32.mrb[3].mxu1 }
 0x12d   :  { %215 = vst.msk [vmem:[#allocation2] sm:$0xff] %vm88_vm0, %v211_v36  ;;  %v314_v42 = vadd.f32 %v303_v40, %v221_v35  ;;  %v754_v43 = vpop.f32.mrb[2].mxu0 }
 0x12e   :  { %319 = vst.msk [vmem:[#allocation3 + $0x18] sm:$0xff] %vm88_vm0, %v315_v39  ;;  %v214_v45 = vadd.f32 %v754_v43, %v108_v38  ;;  %v202_v46 = vpop.f32.mrb[3].mxu0 }
 0x12f   :  { %318 = vst.msk [vmem:[#allocation3 + $0x10] sm:$0xff] %vm88_vm0, %v314_v42  ;;  %v213_v49 = vadd.f32 %v202_v46, %v107_v41  ;;  %v782_v51 = vpop.f32.mrb[4].mxu1 }
 0x130   :  { %218 = vst.msk [vmem:[#allocation2 + $0x18] sm:$0xff] %vm88_vm0, %v214_v45  ;;  %v416_v53 = vadd.f32 %v782_v51, %v323_v44  ;;  %v404_v54 = vpop.f32.mrb[5].mxu1 }
 0x131   :  { %v444_v55 = vld [vmem:[#allocation3 + $0x8] sm:$0xff]  ;;  %217 = vst.msk [vmem:[#allocation2 + $0x10] sm:$0xff] %vm88_vm0, %v213_v49  ;;  %v779_v57 = vpop.f32.mrb[4].mxu0  ;;  %v415_v58 = vadd.f32 %v404_v54, %v322_v47 }
 0x132   :  { %v455_v59 = vadd.f32 %v679_v48, %v444_v55  ;;  %v443_v60 = vld [vmem:[#allocation3] sm:$0xff]  ;;  %v414_v61 = vadd.f32 %v779_v57, %v321_v50  ;;  %v394_v62 = vpop.f32.mrb[5].mxu0  ;;  %420 = vst.msk [vmem:[#allocation4 + $0x18] sm:$0xff] %vm88_vm0, %v416_v53 }
 0x133   :  { %v454_v63 = vadd.f32 %v679_v48, %v443_v60  ;;  %v425_v0 = vld [vmem:[#allocation2 + $0x8] sm:$0xff]  ;;  %v413_v1 = vadd.f32 %v394_v62, %v320_v52  ;;  %419 = vst.msk [vmem:[#allocation4 + $0x10] sm:$0xff] %vm88_vm0, %v415_v58 }
 0x134   :  { %513 = vrot.lane.b32.xlu1 %v455_v59, %s922_s5  ;;  %479 = vst.msk [vmem:[%s1330_s8 + $0x8] sm:$0xff] %vm473_vm1, %v455_v59  ;;  %v436_v2 = vadd.f32 %v678_v56, %v425_v0  ;;  %v424_v3 = vld [vmem:[#allocation2] sm:$0xff] }
 0x135   :  { %418 = vst.msk [vmem:[#allocation4 + $0x8] sm:$0xff] %vm88_vm0, %v414_v61  ;;  %511 = vrot.lane.b32.xlu0 %v454_v63, %s922_s5  ;;  %v435_v4 = vadd.f32 %v678_v56, %v424_v3  ;;  %v446_v5 = vld [vmem:[#allocation3 + $0x18] sm:$0xff]  ;;  %417 = vst.msk [vmem:[#allocation4] sm:$0xff] %vm88_vm0, %v413_v1 }
 0x136   :  { %478 = vst.msk [vmem:[%s1330_s8] sm:$0xff] %vm473_vm1, %v454_v63  ;;  %v440_v6 = vmul.f32 0.35355338, %v436_v2  ;;  %v457_v7 = vadd.f32 %v679_v48, %v446_v5  ;;  %v445_v8 = vld [vmem:[#allocation3 + $0x10] sm:$0xff] }
 0x137   :  { %v439_v9 = vmul.f32 0.35355338, %v435_v4  ;;  %v456_v10 = vadd.f32 %v679_v48, %v445_v8  ;;  %v427_v11 = vld [vmem:[#allocation2 + $0x18] sm:$0xff] }
 0x138   :  { %568 = vrot.lane.b32.xlu1 %v455_v59, %s923_s20  ;;  %475 = vst.msk [vmem:[%s1329_s7 + $0x8] sm:$0xff] %vm473_vm1, %v440_v6  ;;  %481 = vst.msk [vmem:[%s1330_s8 + $0x18] sm:$0xff] %vm473_vm1, %v457_v7  ;;  %v438_v12 = vadd.f32 %v678_v56, %v427_v11  ;;  %v426_v13 = vld [vmem:[#allocation2 + $0x10] sm:$0xff] }
 0x139   :  { %566 = vrot.lane.b32.xlu0 %v454_v63, %s923_s20  ;;  %474 = vst.msk [vmem:[%s1329_s7] sm:$0xff] %vm473_vm1, %v439_v9  ;;  %480 = vst.msk [vmem:[%s1330_s8 + $0x10] sm:$0xff] %vm473_vm1, %v456_v10  ;;  %v437_v14 = vadd.f32 %v678_v56, %v426_v13  ;;  %v461_v16 = vld [vmem:[#allocation4 + $0x18] sm:$0xff] }
 0x13a   :  { %v442_v17 = vmul.f32 0.35355338, %v438_v12  ;;  %v472_v18 = vadd.f32 %v680_v15, %v461_v16  ;;  %v460_v19 = vld [vmem:[#allocation4 + $0x10] sm:$0xff] }
 0x13b   :  { %v441_v20 = vmul.f32 0.35355338, %v437_v14  ;;  %v471_v22 = vadd.f32 %v680_v15, %v460_v19 }
 0x13c   :  { %v459_v21 = vld [vmem:[#allocation4 + $0x8] sm:$0xff]  ;;  %619 = vrot.lane.b32.xlu1 %v455_v59, %s924_s11  ;;  %477 = vst.msk [vmem:[%s1329_s7 + $0x18] sm:$0xff] %vm473_vm1, %v442_v17  ;;  %v458_v24 = vld [vmem:[#allocation4] sm:$0xff]  ;;  %485 = vst.msk [vmem:[%s1331_s9 + $0x18] sm:$0xff] %vm473_vm1, %v472_v18 }
 0x13d   :  { %v470_v23 = vadd.f32 %v680_v15, %v459_v21  ;;  %617 = vrot.lane.b32.xlu0 %v454_v63, %s924_s11  ;;  %476 = vst.msk [vmem:[%s1329_s7 + $0x10] sm:$0xff] %vm473_vm1, %v441_v20  ;;  %v469_v25 = vadd.f32 %v680_v15, %v458_v24  ;;  %484 = vst.msk [vmem:[%s1331_s9 + $0x10] sm:$0xff] %vm473_vm1, %v471_v22 }
 0x13f   :  { %483 = vst.msk [vmem:[%s1331_s9 + $0x8] sm:$0xff] %vm473_vm1, %v470_v23  ;;  %482 = vst.msk [vmem:[%s1331_s9] sm:$0xff] %vm473_vm1, %v469_v25 }
 0x140   :  { %551 = vrot.lane.b32.xlu1 %v440_v6, %s923_s20 }
 0x141   :  { %492 = vrot.lane.b32.xlu0 %v440_v6, %s922_s5 }
 0x144   :  { %602 = vrot.lane.b32.xlu1 %v440_v6, %s924_s11 }
 0x145   :  { %490 = vrot.lane.b32.xlu0 %v439_v9, %s922_s5 }
 0x148   :  { %517 = vrot.lane.b32.xlu1 %v457_v7, %s922_s5 }
 0x149   :  { %549 = vrot.lane.b32.xlu0 %v439_v9, %s923_s20 }
 0x14c   :  { %572 = vrot.lane.b32.xlu1 %v457_v7, %s923_s20 }
 0x14d   :  { %600 = vrot.lane.b32.xlu0 %v439_v9, %s924_s11 }
 0x150   :  { %623 = vrot.lane.b32.xlu1 %v457_v7, %s924_s11 }
 0x151   :  { %515 = vrot.lane.b32.xlu0 %v456_v10, %s922_s5 }
 0x154   :  { %496 = vrot.lane.b32.xlu1 %v442_v17, %s922_s5 }
 0x155   :  { %570 = vrot.lane.b32.xlu0 %v456_v10, %s923_s20 }
 0x158   :  { %555 = vrot.lane.b32.xlu1 %v442_v17, %s923_s20 }
 0x159   :  { %621 = vrot.lane.b32.xlu0 %v456_v10, %s924_s11 }
 0x15c   :  { %606 = vrot.lane.b32.xlu1 %v442_v17, %s924_s11 }
 0x15d   :  { %553 = vrot.lane.b32.xlu0 %v441_v20, %s923_s20 }
 0x160   :  { %494 = vrot.lane.b32.xlu1 %v441_v20, %s922_s5 }
 0x161   :  { %604 = vrot.lane.b32.xlu0 %v441_v20, %s924_s11 }
 0x164   :  { %534 = vrot.lane.b32.xlu1 %v470_v23, %s922_s5 }
 0x165   :  { %532 = vrot.lane.b32.xlu0 %v469_v25, %s922_s5 }
 0x168   :  { %538 = vrot.lane.b32.xlu1 %v472_v18, %s922_s5 }
 0x169   :  { %536 = vrot.lane.b32.xlu0 %v471_v22, %s922_s5 }
 0x16c   :  { %585 = vrot.lane.b32.xlu1 %v470_v23, %s923_s20 }
 0x16d   :  { %583 = vrot.lane.b32.xlu0 %v469_v25, %s923_s20 }
 0x170   :  { %589 = vrot.lane.b32.xlu1 %v472_v18, %s923_s20 }
 0x171   :  { %587 = vrot.lane.b32.xlu0 %v471_v22, %s923_s20 }
 0x174   :  { %636 = vrot.lane.b32.xlu1 %v470_v23, %s924_s11 }
 0x175   :  { %634 = vrot.lane.b32.xlu0 %v469_v25, %s924_s11 }
 0x178   :  { %640 = vrot.lane.b32.xlu1 %v472_v18, %s924_s11 }
 0x179   :  { %638 = vrot.lane.b32.xlu0 %v471_v22, %s924_s11 }
 0x1a6   :  { %v514_v26 = vpop.permute.xlu1 %513 }
 0x1a7   :  { %686 = vst.msk [vmem:[%s1330_s8 + $0x28] sm:$0xff] %vm473_vm1, %v514_v26  ;;  %v512_v27 = vpop.permute.xlu0 %511 }
 0x1a8   :  { %685 = vst.msk [vmem:[%s1330_s8 + $0x20] sm:$0xff] %vm473_vm1, %v512_v27 }
 0x1aa   :  { %v569_v28 = vpop.permute.xlu1 %568 }
 0x1ab   :  { %698 = vst.msk [vmem:[%s1330_s8 + $0x48] sm:$0xff] %vm473_vm1, %v569_v28  ;;  %v567_v29 = vpop.permute.xlu0 %566 }
 0x1ac   :  { %697 = vst.msk [vmem:[%s1330_s8 + $0x40] sm:$0xff] %vm473_vm1, %v567_v29 }
 0x1ae   :  { %v620_v30 = vpop.permute.xlu1 %619 }
 0x1af   :  { %710 = vst.msk [vmem:[%s1330_s8 + $0x68] sm:$0xff] %vm473_vm1, %v620_v30  ;;  %v618_v31 = vpop.permute.xlu0 %617 }
 0x1b0   :  { %709 = vst.msk [vmem:[%s1330_s8 + $0x60] sm:$0xff] %vm473_vm1, %v618_v31 }
 0x1b2   :  { %v552_v32 = vpop.permute.xlu1 %551 }
 0x1b3   :  { %694 = vst.msk [vmem:[%s1329_s7 + $0x48] sm:$0xff] %vm473_vm1, %v552_v32  ;;  %v493_v33 = vpop.permute.xlu0 %492 }
 0x1b4   :  { %682 = vst.msk [vmem:[%s1329_s7 + $0x28] sm:$0xff] %vm473_vm1, %v493_v33 }
 0x1b6   :  { %v603_v34 = vpop.permute.xlu1 %602 }
 0x1b7   :  { %706 = vst.msk [vmem:[%s1329_s7 + $0x68] sm:$0xff] %vm473_vm1, %v603_v34  ;;  %v491_v35 = vpop.permute.xlu0 %490 }
 0x1b8   :  { %681 = vst.msk [vmem:[%s1329_s7 + $0x20] sm:$0xff] %vm473_vm1, %v491_v35 }
 0x1ba   :  { %v518_v36 = vpop.permute.xlu1 %517 }
 0x1bb   :  { %688 = vst.msk [vmem:[%s1330_s8 + $0x38] sm:$0xff] %vm473_vm1, %v518_v36  ;;  %v550_v37 = vpop.permute.xlu0 %549 }
 0x1bc   :  { %693 = vst.msk [vmem:[%s1329_s7 + $0x40] sm:$0xff] %vm473_vm1, %v550_v37 }
 0x1be   :  { %v573_v38 = vpop.permute.xlu1 %572 }
 0x1bf   :  { %700 = vst.msk [vmem:[%s1330_s8 + $0x58] sm:$0xff] %vm473_vm1, %v573_v38  ;;  %v601_v39 = vpop.permute.xlu0 %600 }
 0x1c0   :  { %705 = vst.msk [vmem:[%s1329_s7 + $0x60] sm:$0xff] %vm473_vm1, %v601_v39 }
 0x1c2   :  { %v624_v40 = vpop.permute.xlu1 %623 }
 0x1c3   :  { %712 = vst.msk [vmem:[%s1330_s8 + $0x78] sm:$0xff] %vm473_vm1, %v624_v40  ;;  %v516_v41 = vpop.permute.xlu0 %515 }
 0x1c4   :  { %687 = vst.msk [vmem:[%s1330_s8 + $0x30] sm:$0xff] %vm473_vm1, %v516_v41 }
 0x1c6   :  { %v497_v42 = vpop.permute.xlu1 %496 }
 0x1c7   :  { %684 = vst.msk [vmem:[%s1329_s7 + $0x38] sm:$0xff] %vm473_vm1, %v497_v42  ;;  %v571_v43 = vpop.permute.xlu0 %570 }
 0x1c8   :  { %699 = vst.msk [vmem:[%s1330_s8 + $0x50] sm:$0xff] %vm473_vm1, %v571_v43 }
 0x1ca   :  { %v556_v44 = vpop.permute.xlu1 %555 }
 0x1cb   :  { %696 = vst.msk [vmem:[%s1329_s7 + $0x58] sm:$0xff] %vm473_vm1, %v556_v44  ;;  %v622_v45 = vpop.permute.xlu0 %621 }
 0x1cc   :  { %711 = vst.msk [vmem:[%s1330_s8 + $0x70] sm:$0xff] %vm473_vm1, %v622_v45 }
 0x1ce   :  { %v607_v46 = vpop.permute.xlu1 %606 }
 0x1cf   :  { %708 = vst.msk [vmem:[%s1329_s7 + $0x78] sm:$0xff] %vm473_vm1, %v607_v46  ;;  %v554_v47 = vpop.permute.xlu0 %553 }
 0x1d0   :  { %695 = vst.msk [vmem:[%s1329_s7 + $0x50] sm:$0xff] %vm473_vm1, %v554_v47 }
 0x1d2   :  { %v495_v48 = vpop.permute.xlu1 %494 }
 0x1d3   :  { %683 = vst.msk [vmem:[%s1329_s7 + $0x30] sm:$0xff] %vm473_vm1, %v495_v48  ;;  %v605_v49 = vpop.permute.xlu0 %604 }
 0x1d4   :  { %707 = vst.msk [vmem:[%s1329_s7 + $0x70] sm:$0xff] %vm473_vm1, %v605_v49 }
 0x1d6   :  { %v535_v50 = vpop.permute.xlu1 %534 }
 0x1d7   :  { %690 = vst.msk [vmem:[%s1331_s9 + $0x28] sm:$0xff] %vm473_vm1, %v535_v50  ;;  %v533_v51 = vpop.permute.xlu0 %532 }
 0x1d8   :  { %689 = vst.msk [vmem:[%s1331_s9 + $0x20] sm:$0xff] %vm473_vm1, %v533_v51 }
 0x1da   :  { %v539_v52 = vpop.permute.xlu1 %538 }
 0x1db   :  { %692 = vst.msk [vmem:[%s1331_s9 + $0x38] sm:$0xff] %vm473_vm1, %v539_v52  ;;  %v537_v53 = vpop.permute.xlu0 %536 }
 0x1dc   :  { %691 = vst.msk [vmem:[%s1331_s9 + $0x30] sm:$0xff] %vm473_vm1, %v537_v53 }
 0x1de   :  { %v586_v54 = vpop.permute.xlu1 %585 }
 0x1df   :  { %702 = vst.msk [vmem:[%s1331_s9 + $0x48] sm:$0xff] %vm473_vm1, %v586_v54  ;;  %v584_v55 = vpop.permute.xlu0 %583 }
 0x1e0   :  { %701 = vst.msk [vmem:[%s1331_s9 + $0x40] sm:$0xff] %vm473_vm1, %v584_v55 }
 0x1e2   :  { %v590_v56 = vpop.permute.xlu1 %589 }
 0x1e3   :  { %704 = vst.msk [vmem:[%s1331_s9 + $0x58] sm:$0xff] %vm473_vm1, %v590_v56  ;;  %v588_v57 = vpop.permute.xlu0 %587 }
 0x1e4   :  { %703 = vst.msk [vmem:[%s1331_s9 + $0x50] sm:$0xff] %vm473_vm1, %v588_v57 }
 0x1e6   :  { %v637_v58 = vpop.permute.xlu1 %636 }
 0x1e7   :  { %714 = vst.msk [vmem:[%s1331_s9 + $0x68] sm:$0xff] %vm473_vm1, %v637_v58  ;;  %v635_v59 = vpop.permute.xlu0 %634 }
 0x1e8   :  { %713 = vst.msk [vmem:[%s1331_s9 + $0x60] sm:$0xff] %vm473_vm1, %v635_v59 }
 0x1ea   :  { %v641_v60 = vpop.permute.xlu1 %640 }
 0x1eb   :  { %716 = vst.msk [vmem:[%s1331_s9 + $0x78] sm:$0xff] %vm473_vm1, %v641_v60  ;;  %v639_v61 = vpop.permute.xlu0 %638 }
 0x1ec   :  { %715 = vst.msk [vmem:[%s1331_s9 + $0x70] sm:$0xff] %vm473_vm1, %v639_v61 }
 0x1ed   :  { %663 = vsyncpa [#allocation6], 1 }
 0x1ee   :  { %664 = vsyncpa [#allocation8], 1 }
 0x1ef   :  { %665 = vsyncpa [#allocation11], 1 }

</bundles_post_ra>
